<compile_context>
chip_gen: v7x
topology: tpu7x:2x2x1
jax: 0.10.0
libtpu: 0.0.40
codegen_flags: <defaults>
</compile_context>

<pallas_src>
import functools

import jax
import jax.numpy as jnp
from jax.experimental import pallas as pl
from jax.experimental.pallas import tpu as pltpu

_LANE = 128
_SUBLANE = 8
_STREAM_BUFS = 2  # pipeline depth for the streaming activation / output specs


def _round_up(x, m):
    return (x + m - 1) // m * m


def _conv1x1_kernel(x_ref, w_ref, b_ref, o_ref):
    # x_ref: (tm, C_in)   w_ref: (C_in, tn)   b_ref: (1, tn)   o_ref: (tm, tn)
    # Cast the activation tile to the weight dtype *inside* the kernel (VPU cast,
    # hidden under the DMA); accumulate in f32 on the MXU.
    x = x_ref[...].astype(w_ref.dtype)
    acc = jnp.dot(x, w_ref[...], preferred_element_type=jnp.float32)
    o_ref[...] = (acc + b_ref[...]).astype(o_ref.dtype)


def _vmem_capacity_bytes():
    try:
        return int(pltpu.get_tpu_info().vmem_capacity_bytes)
    except Exception:
        return 64 << 20  # conservative fallback (v7x-sized); safe on all chips


def _plan_tiles(M, C_in, C_out, x_isz, w_isz, out_isz):
    """Pick (tm, tn) from a generation-aware VMEM budget. Returns (tm, tn, phys)."""
    phys = _vmem_capacity_bytes()
    budget = int(phys * 0.4)  # ~25 MiB on v7x (64 MiB), ~51 MiB on v5e/v6e (128 MiB)

    # Resident weight if it fits ~half the budget; otherwise tile output channels.
    if C_in * C_out * w_isz <= budget // 2 or C_out <= _LANE:
        tn = C_out
    else:
        tn = max(_LANE, (budget // 4) // (C_in * w_isz) // _LANE * _LANE)
        tn = min(tn, _round_up(C_out, _LANE))
    n_n = pl.cdiv(C_out, tn)
    w_bufs = 1 if n_n == 1 else 2  # grid-constant weight: no double-buffering

    # Row tile: the biggest that fits what's left of the budget.
    w_vmem = w_bufs * (C_in + 1) * tn * w_isz
    per_row = _STREAM_BUFS * (C_in * x_isz + tn * out_isz)
    tm = (budget - w_vmem) // max(per_row, 1)
    tm = max(_SUBLANE, min(2048, (tm // _SUBLANE) * _SUBLANE))
    tm = min(tm, _round_up(M, _SUBLANE))
    # Megacore nicety only: ensure >=2 row steps when M is big enough that one
    # extra ~0.35us step is noise.  (No 16-step shrink -- that only hurt v5e/v6e.)
    if M >= 1024 and pl.cdiv(M, tm) < 2:
        tm = _round_up(pl.cdiv(M, 2), _SUBLANE)
    return tm, tn, phys


@functools.partial(jax.jit, static_argnames=("tm", "tn", "w_bufs", "vmem_limit"))
def _conv1x1_rows(x2d, w, b, *, tm, tn, w_bufs, vmem_limit):
    """x2d: (M, C_in); w: (C_in, C_out); b: (1, C_out) -> (M, C_out)."""
    M, C_in = x2d.shape
    C_out = w.shape[1]
    n_m = pl.cdiv(M, tm)
    n_n = pl.cdiv(C_out, tn)

    x_isz = jnp.dtype(x2d.dtype).itemsize
    w_isz = jnp.dtype(w.dtype).itemsize
    cost = pl.CostEstimate(
        flops=2 * M * C_in * C_out,
        transcendentals=0,
        bytes_accessed=(M * C_in * x_isz * n_n      # x re-streamed once per N tile
                        + C_in * C_out * w_isz      # weight streamed once (N outer)
                        + C_out * 4
                        + M * C_out * x_isz),
    )

    return pl.pallas_call(
        _conv1x1_kernel,
        out_shape=jax.ShapeDtypeStruct((M, C_out), x2d.dtype),
        grid_spec=pltpu.PrefetchScalarGridSpec(
            num_scalar_prefetch=0,
            # N (output-channel tile) is the OUTER axis so the weight tile is
            # constant across the inner row sweep and streams from HBM once.
            grid=(n_n, n_m),
            in_specs=[
                # Streaming activation rows: big tile, 2-deep pipeline.
                pl.BlockSpec((tm, C_in), lambda j, i: (i, 0),
                             pipeline_mode=pl.Buffered(_STREAM_BUFS)),
                # Weight / bias: single-buffered when grid-constant (resident),
                # double-buffered only when tiled over N.
                pl.BlockSpec((C_in, tn), lambda j, i: (0, j),
                             pipeline_mode=pl.Buffered(w_bufs)),
                pl.BlockSpec((1, tn), lambda j, i: (0, j),
                             pipeline_mode=pl.Buffered(w_bufs)),
            ],
            out_specs=pl.BlockSpec((tm, tn), lambda j, i: (i, j),
                                   pipeline_mode=pl.Buffered(_STREAM_BUFS)),
        ),
        compiler_params=pltpu.CompilerParams(
            dimension_semantics=("parallel", "parallel"),
            vmem_limit_bytes=vmem_limit,
        ),
        cost_estimate=cost,
    )(x2d, w, b)


def per_trans_transf(payload, seq_lens, weight, bias, *, mxu_bf16=None,
                     tm=None, tn=None):
    """JAX equivalent of PerTransTransf.forward.

    payload : (B, T, C_in) float32
    seq_lens: (B,) int32           (passed through unchanged, like PaddedBatch)
    weight  : (C_out, C_in, 1)     (PyTorch Conv1d weight layout)
    bias    : (C_out,)
    mxu_bf16: None -> auto (bf16 MXU operands only for wide channels); f32 accum.
    returns : ((B, T, C_out) array, seq_lens)
    """
    B, T, C_in = payload.shape
    C_out = weight.shape[0]

    # Conv1d(k=1) weight (C_out, C_in, 1) -> (C_in, C_out) matmul operand.
    w = jnp.transpose(weight[:, :, 0], (1, 0))
    b = bias.reshape(1, C_out).astype(jnp.float32)

    # bf16 MXU operands only pay once the kernel is MXU-bound (wide channels).
    # Weight cast is wrapper-side (params only, cheap); the activation is cast
    # inside the kernel so its HBM stream stays a single f32 pass.
    if mxu_bf16 is None:
        mxu_bf16 = min(C_in, C_out) >= 512
    if mxu_bf16:
        w = w.astype(jnp.bfloat16)

    x2d = payload.reshape(B * T, C_in)
    M = B * T
    x_isz = jnp.dtype(x2d.dtype).itemsize
    w_isz = jnp.dtype(w.dtype).itemsize
    out_isz = jnp.dtype(payload.dtype).itemsize

    tm_auto, tn_auto, phys = _plan_tiles(M, C_in, C_out, x_isz, w_isz, out_isz)
    tm = tm_auto if tm is None else max(_SUBLANE, _round_up(int(tm), _SUBLANE))
    tn = tn_auto if tn is None else int(tn)
    w_bufs = 1 if pl.cdiv(C_out, tn) == 1 else 2

    # Scoped-VMEM request that matches the actual footprint, with headroom.
    w_vmem = w_bufs * (C_in + 1) * tn * w_isz
    tile_vmem = _STREAM_BUFS * tm * (C_in * x_isz + tn * out_isz)
    vmem_limit = int((w_vmem + tile_vmem) * 1.25) + (1 << 20)
    vmem_limit = max(16 << 20, min(vmem_limit, int(phys * 0.75)))

    # TODO(synk): if C_in alone is so large that a (tm, C_in) activation tile /
    # (C_in, 128) weight tile cannot fit VMEM, add a K ("arbitrary") grid axis
    # with an f32 VMEM accumulator; not needed for typical channel counts.
    out2d = _conv1x1_rows(x2d, w, b, tm=tm, tn=tn, w_bufs=w_bufs,
                          vmem_limit=vmem_limit)
    return out2d.reshape(B, T, C_out), seq_lens


def _ref(payload, weight, bias):
    return jnp.einsum("btc,oc->bto", payload, weight[:, :, 0]) + bias


if __name__ == "__main__":
    key = jax.random.PRNGKey(0)

    # --- Test 1: primary small shape ----------------------------------------
    k_x, k_w, k_b, k_l = jax.random.split(key, 4)
    B, T, C_in, C_out = 2, 8, 32, 16
    payload = jax.random.normal(k_x, (B, T, C_in), dtype=jnp.float32)
    seq_lens = jax.random.randint(k_l, (B,), 1, T + 1, dtype=jnp.int32)
    bound = 1.0 / (C_in ** 0.5)
    weight = jax.random.uniform(k_w, (C_out, C_in, 1), jnp.float32, -bound, bound)
    bias = jax.random.uniform(k_b, (C_out,), jnp.float32, -bound, bound)

    out, lens = per_trans_transf(payload, seq_lens, weight, bias)
    out = jax.block_until_ready(out)
    assert out.shape == (B, T, C_out)
    assert jnp.allclose(out, _ref(payload, weight, bias), atol=1e-5, rtol=1e-5)
    assert jnp.array_equal(lens, seq_lens)

    # --- Test 2: uneven final row tile (M % tm != 0, M % 8 != 0) ------------
    k_x2, k_w2, k_b2, k_l2 = jax.random.split(jax.random.PRNGKey(1), 4)
    B2, T2, C_in2, C_out2 = 5, 5, 24, 20          # M = 25, non-multiple of 8
    payload2 = jax.random.normal(k_x2, (B2, T2, C_in2), dtype=jnp.float32)
    seq_lens2 = jax.random.randint(k_l2, (B2,), 1, T2 + 1, dtype=jnp.int32)
    bound2 = 1.0 / (C_in2 ** 0.5)
    weight2 = jax.random.uniform(k_w2, (C_out2, C_in2, 1), jnp.float32,
                                 -bound2, bound2)
    bias2 = jax.random.uniform(k_b2, (C_out2,), jnp.float32, -bound2, bound2)

    out2, lens2 = per_trans_transf(payload2, seq_lens2, weight2, bias2, tm=8)
    out2 = jax.block_until_ready(out2)
    assert out2.shape == (B2, T2, C_out2)
    assert jnp.allclose(out2, _ref(payload2, weight2, bias2), atol=1e-5, rtol=1e-5)
    assert jnp.array_equal(lens2, seq_lens2)

    print("KERNEL_OK")
</pallas_src>

<mosaic_0001>
module attributes {stable_mosaic.version = 11 : i64} {
  func.func @_conv1x1_kernel(%arg0: i32, %arg1: i32, %arg2: memref<16x32xf32, #tpu.memory_space<vmem>>, %arg3: memref<32x16xf32, #tpu.memory_space<vmem>>, %arg4: memref<1x16xf32, #tpu.memory_space<vmem>>, %arg5: memref<16x16xf32, #tpu.memory_space<vmem>>) attributes {dimension_semantics = [#tpu.dimension_semantics<parallel>, #tpu.dimension_semantics<parallel>], iteration_bounds = array<i64: 1, 1>, scalar_prefetch = 0 : i64, scratch_operands = 0 : i64, tpu.core_type = #tpu.core_type<tc>, window_params = [{pipeline_mode = #tpu.pipeline_mode<double_buffered>, transform_indices = @transform_0, window_bounds = array<i64: 16, 32>}, {pipeline_mode = #tpu.pipeline_mode<synchronous>, transform_indices = @transform_1, window_bounds = array<i64: 32, 16>}, {pipeline_mode = #tpu.pipeline_mode<synchronous>, transform_indices = @transform_2, window_bounds = array<i64: 1, 16>}, {pipeline_mode = #tpu.pipeline_mode<double_buffered>, transform_indices = @transform_3, window_bounds = array<i64: 16, 16>}]} {
    %c0 = arith.constant 0 : index
    %c0_0 = arith.constant 0 : index
    %0 = vector.load %arg2[%c0, %c0_0] : memref<16x32xf32, #tpu.memory_space<vmem>>, vector<16x32xf32>
    %c0_1 = arith.constant 0 : index
    %c0_2 = arith.constant 0 : index
    %1 = vector.load %arg3[%c0_1, %c0_2] : memref<32x16xf32, #tpu.memory_space<vmem>>, vector<32x16xf32>
    %cst = arith.constant dense<0.000000e+00> : vector<16x16xf32>
    %2 = tpu.matmul %0, %1, %cst {dimension_numbers = #tpu.dot_dimension_numbers<[1], [0], [0], [1], [0, 0, 1, 1], [], []>} : vector<16x32xf32>, vector<32x16xf32>, vector<16x16xf32> -> vector<16x16xf32>
    %c0_3 = arith.constant 0 : index
    %c0_4 = arith.constant 0 : index
    %3 = vector.load %arg4[%c0_3, %c0_4] : memref<1x16xf32, #tpu.memory_space<vmem>>, vector<1x16xf32>
    %4 = vector.broadcast %3 : vector<1x16xf32> to vector<16x16xf32>
    %5 = arith.addf %2, %4 : vector<16x16xf32>
    %c0_5 = arith.constant 0 : index
    %c0_6 = arith.constant 0 : index
    %6 = vector.load %arg5[%c0_5, %c0_6] : memref<16x16xf32, #tpu.memory_space<vmem>>, vector<16x16xf32>
    tpu.vector_store %arg5[%c0_5, %c0_6], %5 {strides = array<i32>} : memref<16x16xf32, #tpu.memory_space<vmem>>, vector<16x16xf32>,
    return
  }
  func.func @transform_0(%arg0: i32, %arg1: i32) -> (i32, i32) {
    %c0_i32 = arith.constant 0 : i32
    %c0_i32_0 = arith.constant 0 : i32
    return %arg1, %c0_i32 : i32, i32
  }
  func.func @transform_1(%arg0: i32, %arg1: i32) -> (i32, i32) {
    %c0_i32 = arith.constant 0 : i32
    %c0_i32_0 = arith.constant 0 : i32
    return %c0_i32, %arg0 : i32, i32
  }
  func.func @transform_2(%arg0: i32, %arg1: i32) -> (i32, i32) {
    %c0_i32 = arith.constant 0 : i32
    %c0_i32_0 = arith.constant 0 : i32
    return %c0_i32, %arg0 : i32, i32
  }
  func.func @transform_3(%arg0: i32, %arg1: i32) -> (i32, i32) {
    %c0_i32 = arith.constant 0 : i32
    return %arg1, %arg0 : i32, i32
  }
}

</mosaic_0001>

<bundles_post_ra>
// kernel: _conv1x1_rows.1
= control target key start
LH: loop header
LB: loop body
LE: loop exit
PB: predicated region body
PF: predicated region fallthrough
CT: control target
= control target key end

     0   :  { %vm28_vm0 = vcmask 261120   ;;  %s240_s0 = inlined_call_operand.vmem [shape: f32[16,32], index: 0, kind: input, shape index: {}]   ;;  %s241_s1 = inlined_call_operand.vmem [shape: f32[32,16], index: 1, kind: input, shape index: {}]   ;;  %s242_s2 = inlined_call_operand.vmem [shape: f32[1,16], index: 2, kind: input, shape index: {}]   ;;  %s243_s3 = inlined_call_operand.hbm [shape: f32[16,16], index: 3, kind: output, shape index: {}]  }
   0x1   :  { %v17_v0 = vld [vmem:[%s241_s1] sm:$0xff]  ;;  %v18_v1 = vld [vmem:[%s241_s1 + $0x8] sm:$0xff]  ;;  %v19_v2 = vld [vmem:[%s241_s1 + $0x10] sm:$0xff] }
   0x2   :  { %v149_v3 = vpack.c.bf16 %v18_v1, %v17_v0  ;;  %v20_v4 = vld [vmem:[%s241_s1 + $0x18] sm:$0xff]  ;;  %v15_v5 = vld [vmem:[%s240_s0] sm:$0xff] }
   0x3   :  { %v153_v6 = vpack.c.bf16 %v20_v4, %v19_v2  ;;  %146 = vmatprep.mubr.msk.f32.mxu0 %vm28_vm0, %v15_v5 }
   0x4   :  { %8 = vsyncpa [#allocation3], 0  ;;  %150 = vmatprep.subr.bf16.mxu0 %v149_v3  ;;  %v16_v7 = vld [vmem:[%s240_s0 + $0x8] sm:$0xff]  ;;  %v129_v8 = vld [vmem:[%s242_s2] ss:$0 sm:$0xff]  ;;  %s184_s1 = smov [#allocation2]  }
   0x5   :  { %152 = vmatpush3.bf16.msra.mxu0 %v149_v3  ;;  %s118_s26 = sshll.u32 %s184_s1, 4  ;;  %vm110_vm1 = vcmask 130048   ;;  %s119_s26 = int_to_ptr.vmem [resolvable:$true] %s118_s26 }
   0x6   :  { %154 = vmatprep.subr.bf16.mxu0 %v153_v6  ;;  %s160_s27 = scalar_lea.vmem %s119_s26, 256  ;;  %p165_p1 = scmp.lt.s32.totalorder %s119_s26, %s119_s26 }
   0x7   :  { %p161_p0 = scmp.ne.s32.totalorder %s119_s26, %s160_s27  ;;  %p166_p2 = scmp.lt.s32.totalorder %s160_s27, %s160_s27 }
   0x9   :  { %156 = vmatpush3.bf16.msra.mxu0 %v153_v6  ;;  %p167_p3 = por %p166_p2, %p165_p1 }
   0xb   :  { %p168_p4 = pnand %p167_p3, %p161_p0 }
   0xc   :  { %147 = vmatmul.mubr.msk.f32.vlgmr.msra.gmra.mrb[0].mxu0 %vm28_vm0, %v16_v7 }
  0xdf   :  { %v148_v9 = vpop.f32.mrb[0].mxu0 }
  0xe0   :  { %v107_v10 = vadd.f32 %v148_v9, %v129_v8  ;;  %v101_v11 = vpop.f32.mrb[1].mxu0 }
  0xe1   :  { %v102_v12 = vadd.f32 %v129_v8, %v101_v11 }
  0xe2   :  { %112 = vst.msk [vmem:[#allocation2 + $0x8] sm:$0xff] %vm110_vm1, %v107_v10 }
  0xe3   :  { %111 = vst.msk [vmem:[#allocation2] sm:$0xff] %vm110_vm1, %v102_v12 }
  0xe4   :  { %171 = shalt.err (!%p168_p4)
}
  0xe5   :  { %s172_s2 = scalar_lea.hbm %s243_s3, 256 }
  0xe6   :  { %p173_p5 = scmp.ne.s32.totalorder %s243_s3, %s172_s2  ;;  %p176_p6 = scmp.lt.u32.totalorder %s172_s2, %s243_s3 }
  0xe8   :  { %p178_p7 = pnand %p176_p6, %p173_p5 }
  0xea   :  { %181 = shalt.err (!%p178_p7)
}
  0xeb   :  { %s185_s6 = smov 128   ;;  %s186_s7 = smov 8  }
  0xec   :  { %124 = dma.vmem_to_hbm [thread:$0]  %s119_s26, 256, %s243_s3, [#allocation3], %s185_s6, %s185_s6, %s186_s7  }
  0xed   :  { %182 = dma.done.wait [#allocation3], 256  }
  0xee   :  { %183 = vsyncadd [#allocation3], 4294967040 }
  0xef   :  { %128 = vsyncpa [#allocation3], 1 }

</bundles_post_ra>
